<compile_context>
chip_gen: v7x
topology: tpu7x:2x2x1
jax: 0.10.0
libtpu: 0.0.40
codegen_flags: <defaults>
</compile_context>

<pallas_src>
import functools

import jax
import jax.numpy as jnp
from jax.experimental import pallas as pl
from jax.experimental.pallas import tpu as pltpu

EPS = 1e-5
NEG_SLOPE = 0.01  # nn.LeakyReLU default


def _round_up(n, m):
    return (n + m - 1) // m * m


def _latent_disc_kernel(x_ref, w1_ref, gamma_ref, beta_ref, w2_ref, b2_ref,
                        o_ref, sum_ref, sumsq_ref, scale_ref, shift_ref,
                        *, batch_size):
    p = pl.program_id(0)   # 0: statistics pass, 1: normalize + head pass
    t = pl.program_id(1)   # batch tile index

    @pl.when(jnp.logical_and(p == 0, t == 0))
    def _init_stats():
        sum_ref[...] = jnp.zeros_like(sum_ref)
        sumsq_ref[...] = jnp.zeros_like(sumsq_ref)

    # layer1 matmul (bias omitted: exactly cancelled by train-mode BatchNorm).
    # bf16 operands, f32 accumulation on the MXU.
    h = jnp.dot(x_ref[...], w1_ref[...], preferred_element_type=jnp.float32)

    @pl.when(p == 0)
    def _accumulate_stats():
        sum_ref[...] += jnp.sum(h, axis=0, keepdims=True)
        sumsq_ref[...] += jnp.sum(h * h, axis=0, keepdims=True)

    @pl.when(jnp.logical_and(p == 1, t == 0))
    def _finalize_stats():
        inv_b = 1.0 / batch_size                       # true B, not padded B
        mean = sum_ref[...] * inv_b
        var = jnp.maximum(sumsq_ref[...] * inv_b - mean * mean, 0.0)
        scale = gamma_ref[...] * jax.lax.rsqrt(var + EPS)
        scale_ref[...] = scale
        shift_ref[...] = beta_ref[...] - mean * scale

    @pl.when(p == 1)
    def _normalize_and_head():
        bn = h * scale_ref[...] + shift_ref[...]                    # folded BN affine
        a = jnp.where(bn >= 0, bn, NEG_SLOPE * bn)                  # LeakyReLU
        # width-1 head on the VPU/XLU (avoid an N=1 MXU matmul)
        y = jnp.sum(a * w2_ref[...], axis=-1, keepdims=True) + b2_ref[...]
        o_ref[...] = y.astype(o_ref.dtype)


def latent_discriminator(x, params, *, batch_tile=512):
    """x: (B, D) float32.  Returns (B, 1) float32 logits (train-mode BN)."""
    B, D = x.shape
    H = params["w1"].shape[1]

    # Batch tile: multiple of 16 (bf16 sublane packing), capped so double-buffered
    # x tiles stay far below the v7x 64 MiB VMEM budget.
    TB = min(_round_up(batch_tile, 16), _round_up(B, 16))
    B_pad = _round_up(B, TB)
    n_tiles = B_pad // TB

    x_bf = x.astype(jnp.bfloat16)
    if B_pad != B:
        # zero rows contribute exactly 0 to sum / sumsq (no bias added in-kernel)
        x_bf = jnp.pad(x_bf, ((0, B_pad - B), (0, 0)))
    w1_bf = params["w1"].astype(jnp.bfloat16)
    gamma = params["gamma"].reshape(1, H).astype(jnp.float32)
    beta = params["beta"].reshape(1, H).astype(jnp.float32)
    w2_row = params["w2"].reshape(1, H).astype(jnp.float32)
    b2 = params["b2"].reshape(1, 1).astype(jnp.float32)

    kernel = functools.partial(_latent_disc_kernel, batch_size=B)

    inv = lambda p, t: (0, 0)       # grid-invariant: weights stay VMEM-resident
    xmap = lambda p, t: (t, 0)      # batch tiles of x
    # Output: park on block 0 during the stats pass (it is fully overwritten at the
    # start of pass 1 before its only writeback) -> exactly one HBM write per tile.
    omap = lambda p, t: (t * p, 0)

    flops = 2 * (2 * B_pad * D * H) + 10 * B_pad * H
    bytes_accessed = (2 * B_pad * D * 2      # x read in both passes (bf16)
                      + D * H * 2 + 4 * H * 4 + 4
                      + B_pad * 4)           # output
    cost = pl.CostEstimate(flops=flops, transcendentals=H,
                           bytes_accessed=bytes_accessed)

    out = pl.pallas_call(
        kernel,
        grid=(2, n_tiles),
        in_specs=[
            pl.BlockSpec((TB, D), xmap),    # x tile (bf16)
            pl.BlockSpec((D, H), inv),      # W1 (bf16, resident)
            pl.BlockSpec((1, H), inv),      # gamma
            pl.BlockSpec((1, H), inv),      # beta
            pl.BlockSpec((1, H), inv),      # W2 as a row
            pl.BlockSpec((1, 1), inv),      # b2
        ],
        out_specs=pl.BlockSpec((TB, 1), omap),
        out_shape=jax.ShapeDtypeStruct((B_pad, 1), jnp.float32),
        scratch_shapes=[pltpu.VMEM((1, H), jnp.float32) for _ in range(4)],
        compiler_params=pltpu.CompilerParams(
            # Both axes are sequential: the pass axis carries the stats dependency,
            # and the batch axis accumulates into shared VMEM scratch.
            # TODO(synk): on v7x megacore, split the stats accumulation per core and
            # combine (CMEM/barrier) so the batch-tile axis can be marked "parallel".
            dimension_semantics=("arbitrary", "arbitrary"),
            vmem_limit_bytes=32 * 1024 * 1024,   # explicit budget, fits v7x 64 MiB
        ),
        cost_estimate=cost,
    )(x_bf, w1_bf, gamma, beta, w2_row, b2)

    return out[:B]


def init_params(key, in_features, feature_multiplier=1):
    """Deterministic synthetic init (PyTorch-style uniform bounds)."""
    H = 16 * feature_multiplier
    k1, k2, k3, k4 = jax.random.split(key, 4)
    bound1 = 1.0 / jnp.sqrt(in_features)
    bound2 = 1.0 / jnp.sqrt(H)
    return {
        # stored pre-transposed: (D, H) and (H, 1)
        "w1": jax.random.uniform(k1, (in_features, H), jnp.float32, -bound1, bound1),
        "b1": jax.random.uniform(k2, (1, H), jnp.float32, -bound1, bound1),
        "gamma": jnp.ones((1, H), jnp.float32),   # BatchNorm1d weight init
        "beta": jnp.zeros((1, H), jnp.float32),   # BatchNorm1d bias init
        "w2": jax.random.uniform(k3, (H, 1), jnp.float32, -bound2, bound2),
        "b2": jax.random.uniform(k4, (1, 1), jnp.float32, -bound2, bound2),
    }


def _reference(x, p):
    """Plain-JAX reference (inputs rounded to bf16, matching the kernel's MXU path)."""
    xb = x.astype(jnp.bfloat16).astype(jnp.float32)
    w1 = p["w1"].astype(jnp.bfloat16).astype(jnp.float32)
    h = xb @ w1 + p["b1"]
    mean = jnp.mean(h, axis=0, keepdims=True)
    var = jnp.mean((h - mean) ** 2, axis=0, keepdims=True)   # biased, train mode
    bn = (h - mean) / jnp.sqrt(var + EPS) * p["gamma"] + p["beta"]
    a = jnp.where(bn >= 0, bn, NEG_SLOPE * bn)
    return a @ p["w2"] + p["b2"]


if __name__ == "__main__":
    key = jax.random.PRNGKey(0)
    kx, kp = jax.random.split(key)

    B, D = 8, 32          # small latent batch: (batch, latent_dim)
    x = jax.random.normal(kx, (B, D), jnp.float32)
    params = init_params(kp, D, feature_multiplier=1)

    out = jax.block_until_ready(latent_discriminator(x, params))
    ref = _reference(x, params)

    assert out.shape == (B, 1)
    assert jnp.allclose(out, ref, atol=5e-3, rtol=5e-3), (out, ref)
    print("KERNEL_OK")
</pallas_src>

<mosaic_0001>
module attributes {stable_mosaic.version = 11 : i64} {
  func.func @_latent_disc_kernel(%arg0: i32, %arg1: i32, %arg2: memref<16x32xbf16, #tpu.memory_space<vmem>>, %arg3: memref<32x16xbf16, #tpu.memory_space<vmem>>, %arg4: memref<1x16xf32, #tpu.memory_space<vmem>>, %arg5: memref<1x16xf32, #tpu.memory_space<vmem>>, %arg6: memref<1x16xf32, #tpu.memory_space<vmem>>, %arg7: memref<1x1xf32, #tpu.memory_space<vmem>>, %arg8: memref<16x1xf32, #tpu.memory_space<vmem>>, %arg9: memref<1x16xf32, #tpu.memory_space<vmem>>, %arg10: memref<1x16xf32, #tpu.memory_space<vmem>>, %arg11: memref<1x16xf32, #tpu.memory_space<vmem>>, %arg12: memref<1x16xf32, #tpu.memory_space<vmem>>) attributes {dimension_semantics = [#tpu.dimension_semantics<arbitrary>, #tpu.dimension_semantics<arbitrary>], iteration_bounds = array<i64: 2, 1>, scalar_prefetch = 0 : i64, scratch_operands = 4 : i64, tpu.core_type = #tpu.core_type<tc>, window_params = [{transform_indices = @transform_0, window_bounds = array<i64: 16, 32>}, {pipeline_mode = #tpu.pipeline_mode<synchronous>, transform_indices = @transform_1, window_bounds = array<i64: 32, 16>}, {pipeline_mode = #tpu.pipeline_mode<synchronous>, transform_indices = @transform_2, window_bounds = array<i64: 1, 16>}, {pipeline_mode = #tpu.pipeline_mode<synchronous>, transform_indices = @transform_3, window_bounds = array<i64: 1, 16>}, {pipeline_mode = #tpu.pipeline_mode<synchronous>, transform_indices = @transform_4, window_bounds = array<i64: 1, 16>}, {pipeline_mode = #tpu.pipeline_mode<synchronous>, transform_indices = @transform_5, window_bounds = array<i64: 1, 1>}, {transform_indices = @transform_6, window_bounds = array<i64: 16, 1>}]} {
    %c0_i32 = arith.constant 0 : i32
    %0 = arith.cmpi eq, %arg0, %c0_i32 : i32
    %c0_i32_0 = arith.constant 0 : i32
    %1 = arith.cmpi eq, %arg1, %c0_i32_0 : i32
    %2 = arith.andi %0, %1 : i1
    %3 = arith.extui %2 : i1 to i32
    %c0_i32_1 = arith.constant 0 : i32
    %4 = arith.cmpi ne, %3, %c0_i32_1 : i32
    scf.if %4 {
      %cst_11 = arith.constant 0.000000e+00 : f32
      %19 = vector.broadcast %cst_11 : f32 to vector<1x16xf32>
      %c0_12 = arith.constant 0 : index
      %c0_13 = arith.constant 0 : index
      %20 = vector.load %arg9[%c0_12, %c0_13] : memref<1x16xf32, #tpu.memory_space<vmem>>, vector<1x16xf32>
      tpu.vector_store %arg9[%c0_12, %c0_13], %19 {strides = array<i32>} : memref<1x16xf32, #tpu.memory_space<vmem>>, vector<1x16xf32>,
      %cst_14 = arith.constant 0.000000e+00 : f32
      %21 = vector.broadcast %cst_14 : f32 to vector<1x16xf32>
      %c0_15 = arith.constant 0 : index
      %c0_16 = arith.constant 0 : index
      %22 = vector.load %arg10[%c0_15, %c0_16] : memref<1x16xf32, #tpu.memory_space<vmem>>, vector<1x16xf32>
      tpu.vector_store %arg10[%c0_15, %c0_16], %21 {strides = array<i32>} : memref<1x16xf32, #tpu.memory_space<vmem>>, vector<1x16xf32>,
    } else {
    }
    %c0 = arith.constant 0 : index
    %c0_2 = arith.constant 0 : index
    %5 = vector.load %arg2[%c0, %c0_2] : memref<16x32xbf16, #tpu.memory_space<vmem>>, vector<16x32xbf16>
    %c0_3 = arith.constant 0 : index
    %c0_4 = arith.constant 0 : index
    %6 = vector.load %arg3[%c0_3, %c0_4] : memref<32x16xbf16, #tpu.memory_space<vmem>>, vector<32x16xbf16>
    %cst = arith.constant dense<0.000000e+00> : vector<16x16xf32>
    %7 = tpu.matmul %5, %6, %cst {dimension_numbers = #tpu.dot_dimension_numbers<[1], [0], [0], [1], [0, 0, 1, 1], [], []>} : vector<16x32xbf16>, vector<32x16xbf16>, vector<16x16xf32> -> vector<16x16xf32>
    %c0_i32_5 = arith.constant 0 : i32
    %8 = arith.cmpi eq, %arg0, %c0_i32_5 : i32
    %9 = arith.extui %8 : i1 to i32
    %c0_i32_6 = arith.constant 0 : i32
    %10 = arith.cmpi ne, %9, %c0_i32_6 : i32
    scf.if %10 {
      %c0_11 = arith.constant 0 : index
      %c0_12 = arith.constant 0 : index
      %19 = vector.load %arg9[%c0_11, %c0_12] : memref<1x16xf32, #tpu.memory_space<vmem>>, vector<1x16xf32>
      %cst_13 = arith.constant dense<0.000000e+00> : vector<16xf32>
      %20 = vector.multi_reduction <add>, %7, %cst_13 [0] : vector<16x16xf32> to vector<16xf32>
      %21 = vector.shape_cast %20 : vector<16xf32> to vector<1x16xf32>
      %22 = arith.addf %19, %21 : vector<1x16xf32>
      %c0_14 = arith.constant 0 : index
      %c0_15 = arith.constant 0 : index
      %23 = vector.load %arg9[%c0_14, %c0_15] : memref<1x16xf32, #tpu.memory_space<vmem>>, vector<1x16xf32>
      tpu.vector_store %arg9[%c0_14, %c0_15], %22 {strides = array<i32>} : memref<1x16xf32, #tpu.memory_space<vmem>>, vector<1x16xf32>,
      %c0_16 = arith.constant 0 : index
      %c0_17 = arith.constant 0 : index
      %24 = vector.load %arg10[%c0_16, %c0_17] : memref<1x16xf32, #tpu.memory_space<vmem>>, vector<1x16xf32>
      %25 = arith.mulf %7, %7 : vector<16x16xf32>
      %cst_18 = arith.constant dense<0.000000e+00> : vector<16xf32>
      %26 = vector.multi_reduction <add>, %25, %cst_18 [0] : vector<16x16xf32> to vector<16xf32>
      %27 = vector.shape_cast %26 : vector<16xf32> to vector<1x16xf32>
      %28 = arith.addf %24, %27 : vector<1x16xf32>
      %c0_19 = arith.constant 0 : index
      %c0_20 = arith.constant 0 : index
      %29 = vector.load %arg10[%c0_19, %c0_20] : memref<1x16xf32, #tpu.memory_space<vmem>>, vector<1x16xf32>
      tpu.vector_store %arg10[%c0_19, %c0_20], %28 {strides = array<i32>} : memref<1x16xf32, #tpu.memory_space<vmem>>, vector<1x16xf32>,
    } else {
    }
    %c1_i32 = arith.constant 1 : i32
    %11 = arith.cmpi eq, %arg0, %c1_i32 : i32
    %c0_i32_7 = arith.constant 0 : i32
    %12 = arith.cmpi eq, %arg1, %c0_i32_7 : i32
    %13 = arith.andi %11, %12 : i1
    %14 = arith.extui %13 : i1 to i32
    %c0_i32_8 = arith.constant 0 : i32
    %15 = arith.cmpi ne, %14, %c0_i32_8 : i32
    scf.if %15 {
      %c0_11 = arith.constant 0 : index
      %c0_12 = arith.constant 0 : index
      %19 = vector.load %arg9[%c0_11, %c0_12] : memref<1x16xf32, #tpu.memory_space<vmem>>, vector<1x16xf32>
      %cst_13 = arith.constant 1.250000e-01 : f32
      %20 = vector.broadcast %cst_13 : f32 to vector<1x16xf32>
      %21 = arith.mulf %19, %20 : vector<1x16xf32>
      %c0_14 = arith.constant 0 : index
      %c0_15 = arith.constant 0 : index
      %22 = vector.load %arg10[%c0_14, %c0_15] : memref<1x16xf32, #tpu.memory_space<vmem>>, vector<1x16xf32>
      %cst_16 = arith.constant 1.250000e-01 : f32
      %23 = vector.broadcast %cst_16 : f32 to vector<1x16xf32>
      %24 = arith.mulf %22, %23 : vector<1x16xf32>
      %25 = arith.mulf %21, %21 : vector<1x16xf32>
      %26 = arith.subf %24, %25 : vector<1x16xf32>
      %cst_17 = arith.constant 0.000000e+00 : f32
      %27 = vector.broadcast %cst_17 : f32 to vector<1x16xf32>
      %28 = arith.maximumf %26, %27 : vector<1x16xf32>
      %c0_18 = arith.constant 0 : index
      %c0_19 = arith.constant 0 : index
      %29 = vector.load %arg4[%c0_18, %c0_19] : memref<1x16xf32, #tpu.memory_space<vmem>>, vector<1x16xf32>
      %cst_20 = arith.constant 9.99999974E-6 : f32
      %30 = vector.broadcast %cst_20 : f32 to vector<1x16xf32>
      %31 = arith.addf %28, %30 : vector<1x16xf32>
      %32 = math.rsqrt %31 : vector<1x16xf32>
      %33 = arith.mulf %29, %32 : vector<1x16xf32>
      %c0_21 = arith.constant 0 : index
      %c0_22 = arith.constant 0 : index
      %34 = vector.load %arg11[%c0_21, %c0_22] : memref<1x16xf32, #tpu.memory_space<vmem>>, vector<1x16xf32>
      tpu.vector_store %arg11[%c0_21, %c0_22], %33 {strides = array<i32>} : memref<1x16xf32, #tpu.memory_space<vmem>>, vector<1x16xf32>,
      %c0_23 = arith.constant 0 : index
      %c0_24 = arith.constant 0 : index
      %35 = vector.load %arg5[%c0_23, %c0_24] : memref<1x16xf32, #tpu.memory_space<vmem>>, vector<1x16xf32>
      %36 = arith.mulf %21, %33 : vector<1x16xf32>
      %37 = arith.subf %35, %36 : vector<1x16xf32>
      %c0_25 = arith.constant 0 : index
      %c0_26 = arith.constant 0 : index
      %38 = vector.load %arg12[%c0_25, %c0_26] : memref<1x16xf32, #tpu.memory_space<vmem>>, vector<1x16xf32>
      tpu.vector_store %arg12[%c0_25, %c0_26], %37 {strides = array<i32>} : memref<1x16xf32, #tpu.memory_space<vmem>>, vector<1x16xf32>,
    } else {
    }
    %c1_i32_9 = arith.constant 1 : i32
    %16 = arith.cmpi eq, %arg0, %c1_i32_9 : i32
    %17 = arith.extui %16 : i1 to i32
    %c0_i32_10 = arith.constant 0 : i32
    %18 = arith.cmpi ne, %17, %c0_i32_10 : i32
    scf.if %18 {
      %c0_11 = arith.constant 0 : index
      %c0_12 = arith.constant 0 : index
      %19 = vector.load %arg11[%c0_11, %c0_12] : memref<1x16xf32, #tpu.memory_space<vmem>>, vector<1x16xf32>
      %20 = vector.broadcast %19 : vector<1x16xf32> to vector<16x16xf32>
      %21 = arith.mulf %7, %20 : vector<16x16xf32>
      %c0_13 = arith.constant 0 : index
      %c0_14 = arith.constant 0 : index
      %22 = vector.load %arg12[%c0_13, %c0_14] : memref<1x16xf32, #tpu.memory_space<vmem>>, vector<1x16xf32>
      %23 = vector.broadcast %22 : vector<1x16xf32> to vector<16x16xf32>
      %24 = arith.addf %21, %23 : vector<16x16xf32>
      %cst_15 = arith.constant 0.000000e+00 : f32
      %25 = vector.broadcast %cst_15 : f32 to vector<16x16xf32>
      %26 = arith.cmpf oge, %24, %25 : vector<16x16xf32>
      %cst_16 = arith.constant 0.00999999977 : f32
      %27 = vector.broadcast %cst_16 : f32 to vector<16x16xf32>
      %28 = arith.mulf %27, %24 : vector<16x16xf32>
      %29 = arith.select %26, %24, %28 : vector<16x16xi1>, vector<16x16xf32>
      %c0_17 = arith.constant 0 : index
      %c0_18 = arith.constant 0 : index
      %30 = vector.load %arg6[%c0_17, %c0_18] : memref<1x16xf32, #tpu.memory_space<vmem>>, vector<1x16xf32>
      %31 = vector.broadcast %30 : vector<1x16xf32> to vector<16x16xf32>
      %32 = arith.mulf %29, %31 : vector<16x16xf32>
      %cst_19 = arith.constant dense<0.000000e+00> : vector<16xf32>
      %33 = vector.multi_reduction <add>, %32, %cst_19 [1] : vector<16x16xf32> to vector<16xf32>
      %34 = vector.shape_cast %33 : vector<16xf32> to vector<16x1xf32>
      %c0_20 = arith.constant 0 : index
      %c0_21 = arith.constant 0 : index
      %35 = vector.load %arg7[%c0_20, %c0_21] : memref<1x1xf32, #tpu.memory_space<vmem>>, vector<1x1xf32>
      %36 = vector.broadcast %35 : vector<1x1xf32> to vector<16x1xf32>
      %37 = arith.addf %34, %36 : vector<16x1xf32>
      %c0_22 = arith.constant 0 : index
      %c0_23 = arith.constant 0 : index
      %38 = vector.load %arg8[%c0_22, %c0_23] : memref<16x1xf32, #tpu.memory_space<vmem>>, vector<16x1xf32>
      tpu.vector_store %arg8[%c0_22, %c0_23], %37 {strides = array<i32>} : memref<16x1xf32, #tpu.memory_space<vmem>>, vector<16x1xf32>,
    } else {
    }
    return
  }
  func.func @transform_0(%arg0: i32, %arg1: i32) -> (i32, i32) {
    %c0_i32 = arith.constant 0 : i32
    %c0_i32_0 = arith.constant 0 : i32
    return %arg1, %c0_i32 : i32, i32
  }
  func.func @transform_1(%arg0: i32, %arg1: i32) -> (i32, i32) {
    %c0_i32 = arith.constant 0 : i32
    %c0_i32_0 = arith.constant 0 : i32
    %c0_i32_1 = arith.constant 0 : i32
    return %c0_i32, %c0_i32_0 : i32, i32
  }
  func.func @transform_2(%arg0: i32, %arg1: i32) -> (i32, i32) {
    %c0_i32 = arith.constant 0 : i32
    %c0_i32_0 = arith.constant 0 : i32
    %c0_i32_1 = arith.constant 0 : i32
    return %c0_i32, %c0_i32_0 : i32, i32
  }
  func.func @transform_3(%arg0: i32, %arg1: i32) -> (i32, i32) {
    %c0_i32 = arith.constant 0 : i32
    %c0_i32_0 = arith.constant 0 : i32
    %c0_i32_1 = arith.constant 0 : i32
    return %c0_i32, %c0_i32_0 : i32, i32
  }
  func.func @transform_4(%arg0: i32, %arg1: i32) -> (i32, i32) {
    %c0_i32 = arith.constant 0 : i32
    %c0_i32_0 = arith.constant 0 : i32
    %c0_i32_1 = arith.constant 0 : i32
    return %c0_i32, %c0_i32_0 : i32, i32
  }
  func.func @transform_5(%arg0: i32, %arg1: i32) -> (i32, i32) {
    %c0_i32 = arith.constant 0 : i32
    %c0_i32_0 = arith.constant 0 : i32
    %c0_i32_1 = arith.constant 0 : i32
    return %c0_i32, %c0_i32_0 : i32, i32
  }
  func.func @transform_6(%arg0: i32, %arg1: i32) -> (i32, i32) {
    %0 = arith.muli %arg1, %arg0 : i32
    %c0_i32 = arith.constant 0 : i32
    %c0_i32_0 = arith.constant 0 : i32
    return %0, %c0_i32 : i32, i32
  }
}

</mosaic_0001>

<bundles_post_ra>
// kernel: tpu_custom_call.1
= control target key start
LH: loop header
LB: loop body
LE: loop exit
PB: predicated region body
PF: predicated region fallthrough
CT: control target
= control target key end

     0   :  { %s662_s23 = smov 0   ;;  %s664_s24 = smov 0   ;;  %s719_s0 = inlined_call_operand.vmem [shape: bf16[16,32], index: 0, kind: input, shape index: {}]   ;;  %s720_s1 = inlined_call_operand.vmem [shape: bf16[32,16], index: 1, kind: input, shape index: {}]   ;;  %s721_s2 = inlined_call_operand.vmem [shape: f32[1,16], index: 2, kind: input, shape index: {}]   ;;  %s722_s3 = inlined_call_operand.vmem [shape: f32[1,16], index: 3, kind: input, shape index: {}]   ;;  %s723_s4 = inlined_call_operand.vmem [shape: f32[1,16], index: 4, kind: input, shape index: {}]   ;;  %s724_s5 = inlined_call_operand.<no memory space> [shape: f32[1,1], index: 5, kind: input, shape index: {}]   ;;  %s725_s6 = inlined_call_operand.vmem [shape: f32[16,1], index: 6, kind: output, shape index: {}]  }
   0x1   :  { %v11_v0 = vstv %s724_s5  ;;  %s666_s25 = smov 0  }
   0x2   :  { %12 = vst [vmem:[#allocation6] sm:$0x1] %v11_v0 }
   0x3 LB: > { %s30_s5 = sadd.s32 1, %s615_s24  ;;  %p535_p0 = scmp.ge.s32.totalorder %s619_s25, 1  ;;  %s619_s25 = sphi %s666_s25, %s18_s25   ;;  %s615_s24 = sphi %s664_s24, %s727_s24   ;;  %s611_s23 = sphi %s662_s23, %s726_s23  }
   0x4   : > { %p32_p1 = scmp.ge.s32.totalorder %s30_s5, 2  ;;  %p229_p2 = scmp.lt.s32.totalorder %s619_s25, 3 }
   0x6   : > { %s729_s5 = smov (%p32_p1, %s30_s5), 0  ;;  %p230_p3 = pnand %p535_p0, %p229_p2 }
   0x7   : > { %p275_p4 = scmp.eq.s32.totalorder (!%p230_p3), %s611_s23, 0 }
   0x8   : > { %233 = sbr.rel (%p230_p3) target bundleno = 462 (0x1ce), region = 44 }
   0xf   : > { %280 = sbr.rel (!%p275_p4) target bundleno = 22 (0x16), region = 48  ;;  %vm281_vm0 = vcmask (%p275_p4), 122880   ;;  %v621_v1 = vmov (%p275_p4), 0.0  }
  0x10   : > { %282 = vst.msk [vmem:[#allocation2] sm:$0x1] (%p275_p4), %vm281_vm0, %v621_v1  ;;  %283 = vst.msk [vmem:[#allocation3] sm:$0x1] (%p275_p4), %vm281_vm0, %v621_v1 }
  0x16 PF: > { %v592_v2 = vld [vmem:[%s720_s1] sm:$0xff]   ;;  %v622_v3 = vmov 0.0   ;;  %v593_v4 = vld [vmem:[%s720_s1 + $0x8] sm:$0xff]   ;;  %vm623_vm1 = vmmov 0   ;;  %vm307_vm2 = vcmask 261120   ;;  %p541_p5 = scmp.ne.s32.totalorder %s611_s23, 0 }
  0x17   : > { %557 = vmatprep.subr.bf16.mxu0 %v622_v3  ;;  %561 = vmatprep.mubr.msk.bf16.mxu0 %vm623_vm1, %v622_v3  ;;  %v594_v5 = vld [vmem:[%s719_s0] sm:$0xff]   ;;  %vm356_vm3 = vcmask (!%p541_p5), 130048   ;;  %vm367_vm4 = vcmask (!%p541_p5), 122880  }
  0x18   : > { %558 = vmatpush3.bf16.msra.mxu0 %v592_v2  ;;  %v355_v27 = vld [vmem:[#allocation2] sm:$0x1] (!%p541_p5)  ;;  %v369_v30 = vld [vmem:[#allocation3] sm:$0x1] (!%p541_p5) }
  0x19   : > { %559 = vmatprep.subr.bf16.mxu0 %v622_v3 }
  0x1c   : > { %560 = vmatpush3.bf16.msra.mxu0 %v593_v4 }
  0x1f   : > { %562 = vmatmul.mubr.msk.bf16.vlgmr.msra.gmra.mrb[0].mxu0 %vm307_vm2, %v594_v5 }
  0xef   : > { %354 = sbr.rel (%p541_p5) target bundleno = 265 (0x109), region = 52 }
  0xf2   : > { %v345_v6 = vpop.f32.mrb[0].mxu0 }
  0xf3   : > { %v563_v7 = vpop.f32.mrb[1].mxu0  ;;  %v370_v10 = vmul.f32 (!%p541_p5), %v345_v6, %v345_v6  ;;  %v357_v12 = vsel (!%p541_p5), %vm356_vm3, %v345_v6, 0.0 }
  0xf4   : > { %v348_v8 = vpop.f32.mrb[2].mxu0 }
  0xf5   : > { %v564_v9 = vpop.f32.mrb[3].mxu0  ;;  %v371_v11 = vmul.f32 (!%p541_p5), %v348_v8, %v348_v8  ;;  %v358_v13 = vsel (!%p541_p5), %vm356_vm3, %v348_v8, 0.0  ;;  %v372_v15 = vsel (!%p541_p5), %vm356_vm3, %v370_v10, 0.0 }
  0xf6   : > { %v359_v14 = vadd.f32 %v358_v13, %v357_v12 }
  0xf7   : > { %v373_v16 = vsel %vm356_vm3, %v371_v11, 0.0 }
  0xf8   : > { %v374_v17 = vadd.f32 %v373_v16, %v372_v15  ;;  %v360_v18 = vrot.slane %v359_v14, 4 }
  0xfa   : > { %v375_v19 = vrot.slane %v374_v17, 4  ;;  %v361_v20 = vadd.f32 %v360_v18, %v359_v14 }
  0xfc   : > { %v376_v21 = vadd.f32 %v375_v19, %v374_v17  ;;  %v362_v22 = vrot.slane %v361_v20, 2 }
  0xfe   : > { %v377_v23 = vrot.slane %v376_v21, 2  ;;  %v363_v24 = vadd.f32 %v362_v22, %v361_v20 }
 0x100   : > { %v378_v25 = vadd.f32 %v377_v23, %v376_v21  ;;  %v364_v26 = vrot.slane %v363_v24, 1 }
 0x102   : > { %v379_v28 = vrot.slane %v378_v25, 1  ;;  %v365_v29 = vadd.f32 %v364_v26, %v363_v24 }
 0x104   : > { %v380_v31 = vadd.f32 %v379_v28, %v378_v25  ;;  %v366_v32 = vadd.f32 %v365_v29, %v355_v27 }
 0x106   : > { %v381_v33 = vadd.f32 %v380_v31, %v369_v30  ;;  %368 = vst.msk [vmem:[#allocation2] sm:$0x1] %vm367_vm4, %v366_v32 }
 0x108   : > { %382 = vst.msk [vmem:[#allocation3] sm:$0x1] %vm367_vm4, %v381_v33 }
 0x109 PF: > { %p383_p6 = scmp.eq.s32.totalorder %s611_s23, 1 }
 0x10a   : > { %v395_v42 = vld [vmem:[%s721_s2] sm:$0x1] (%p383_p6)  ;;  %vm399_vm5 = vcmask (%p383_p6), 122880  }
 0x10b   : > { %387 = sbr.rel (!%p383_p6) target bundleno = 298 (0x12a), region = 56  ;;  %v401_v45 = vld [vmem:[%s722_s3] sm:$0x1] (%p383_p6) }
 0x10d   : > { %v388_v34 = vld [vmem:[#allocation2] sm:$0x1] (%p383_p6) }
 0x10e   : > { %v389_v36 = vmul.f32 (%p383_p6), 0.125, %v388_v34 }
 0x10f   : > { %v390_v35 = vld [vmem:[#allocation3] sm:$0x1] (%p383_p6) }
 0x110   : > { %v391_v37 = vmul.f32 (%p383_p6), 0.125, %v390_v35  ;;  %v392_v38 = vmul.f32 (%p383_p6), %v389_v36, %v389_v36 }
 0x112   : > { %v393_v39 = vsub.f32 %v391_v37, %v392_v38 }
 0x114   : > { %v394_v40 = vmax.f32 %v393_v39, 0.0 }
 0x116   : > { %v396_v41 = vadd.f32 1e-05, %v394_v40 }
 0x118   : > { %595 = vrsqrt.f32 %v396_v41 }
 0x122   : > { %v596_v43 = vpop.eup %595 }
 0x123   : > { %v398_v44 = vmul.f32 %v596_v43, %v395_v42 }
 0x125   : > { %400 = vst.msk [vmem:[#allocation4] sm:$0x1] %vm399_vm5, %v398_v44  ;;  %v402_v46 = vmul.f32 %v398_v44, %v389_v36 }
 0x127   : > { %v403_v47 = vsub.f32 %v401_v45, %v402_v46 }
 0x129   : > { %404 = vst.msk [vmem:[#allocation5] sm:$0x1] %vm399_vm5, %v403_v47 }
 0x12a PF: > { %p543_p7 = scmp.ne.s32.totalorder %s611_s23, 1 }
 0x12b   : > { %v546_v54 = vld [vmem:[%s723_s4] ss:$0 sm:$0xff] (!%p543_p7)  ;;  %vm441_vm8 = vcmask (!%p543_p7), 130048   ;;  %v547_v63 = vld [vmem:[#allocation6] ss:$0 sm:$0xff] (!%p543_p7)  ;;  %vm457_vm9 = vcmask (!%p543_p7), 7168  }
 0x12c   : > { %407 = sbr.rel (%p543_p7) target bundleno = 462 (0x1ce), region = 60  ;;  %v544_v48 = vld [vmem:[#allocation4] ss:$0 sm:$0xff] (!%p543_p7) }
 0x12d   : > { %v415_v50 = vmul.f32 (!%p543_p7), %v544_v48, %v345_v6  ;;  %v416_v51 = vmul.f32 (!%p543_p7), %v544_v48, %v348_v8 }
 0x130   : > { %v545_v49 = vld [vmem:[#allocation5] ss:$0 sm:$0xff] (!%p543_p7) }
 0x131   : > { %v424_v52 = vadd.f32 (!%p543_p7), %v545_v49, %v415_v50  ;;  %v425_v53 = vadd.f32 (!%p543_p7), %v545_v49, %v416_v51 }
 0x133   : > { %vm426_vm6 = vcmp.ge.f32.partialorder %v424_v52, 0.0  ;;  %v428_v55 = vmul.f32 0.01, %v424_v52  ;;  %vm427_vm7 = vcmp.ge.f32.partialorder %v425_v53, 0.0  ;;  %v429_v56 = vmul.f32 0.01, %v425_v53 }
 0x135   : > { %v430_v57 = vsel %vm426_vm6, %v424_v52, %v428_v55  ;;  %v431_v58 = vsel %vm427_vm7, %v425_v53, %v429_v56 }
 0x136   : > { %v439_v59 = vmul.f32 %v546_v54, %v430_v57  ;;  %v440_v60 = vmul.f32 %v546_v54, %v431_v58 }
 0x138   : > { %v442_v61 = vsel %vm441_vm8, %v439_v59, 0.0  ;;  %v445_v62 = vsel %vm441_vm8, %v440_v60, 0.0 }
 0x139   : > { %443 = vadd.xlane.f32.xlu0 %v442_v61 }
 0x13d   : > { %446 = vadd.xlane.f32.xlu0 %v445_v62 }
 0x1c6   : > { %v444_v0 = vpop.xlane.xlu0 %443 }
 0x1c7   : > { %v455_v1 = vadd.f32 %v547_v63, %v444_v0 }
 0x1c9   : > { %458 = vst.msk [vmem:[%s725_s6] sm:$0xff] %vm457_vm9, %v455_v1 }
 0x1ca   : > { %v447_v2 = vpop.xlane.xlu0 %446 }
 0x1cb   : > { %v456_v3 = vadd.f32 %v547_v63, %v447_v2 }
 0x1cd   : > { %459 = vst.msk [vmem:[%s725_s6 + $0x8] sm:$0xff] %vm457_vm9, %v456_v3 }
 0x1ce PF: > { %s18_s25 = sadd.s32 1, %s619_s25   ;;  %s726_s23 = smov %s615_s24 }
 0x1cf   : > { %p15_p8 = scmp.ge.s32.totalorder %s18_s25, 4   ;;  %s727_s24 = smov %s729_s5 }
 0x1d1   :  { %17 = sbr.rel (!%p15_p8) target bundleno = 3 (0x3), region = 90 }

</bundles_post_ra>
